<compile_context>
chip_gen: v7x
topology: tpu7x:2x2x1
jax: 0.10.0
libtpu: 0.0.40
codegen_flags: <defaults>
</compile_context>

<pallas_src>
import functools

import jax
import jax.numpy as jnp
from jax.experimental import pallas as pl
from jax.experimental.pallas import tpu as pltpu


def _row_sum(t):
    # Reduce the (sublane, lane) axes of a (bb, R, L) tile, keepdims.
    return jnp.sum(jnp.sum(t, axis=2, keepdims=True), axis=1, keepdims=True)


def _layernorm_kernel(x_ref, gb_ref, o_ref, *, eps, n_feat):
    # x_ref: (bb, R, L) block of per-sample features; gb_ref: (2, R, L) gamma|beta.
    x = x_ref[...].astype(jnp.float32)

    inv_n = 1.0 / n_feat
    mean = _row_sum(x) * inv_n                              # (bb, 1, 1)
    diff = x - mean
    # torch.Tensor.std() default is the unbiased estimator (divisor N-1).
    # Two-pass form kept deliberately (no sum/sumsq cancellation issues).
    var = _row_sum(diff * diff) * (1.0 / (n_feat - 1))
    std = jnp.sqrt(var)                                     # (bb, 1, 1)

    # Per-row reciprocal (bb values) + broadcast multiply instead of a
    # per-element divide over bb*N elements.
    inv = pl.reciprocal(std + eps, approx=False)
    y = diff * inv

    gb = gb_ref[...]
    gamma = gb[0]                                           # (R, L)
    beta = gb[1]                                            # (R, L)
    o_ref[...] = (y * gamma + beta).astype(o_ref.dtype)


def _round_down_multiple(x, m):
    return (x // m) * m


def _choose_block_rows(B, N, itemsize, vmem_budget_bytes):
    """Largest batch tile whose pipelined buffers fit the VMEM budget."""
    # Per batch row: input block + output block, each double-buffered.
    per_row = 4 * N * itemsize
    bb = max(1, vmem_budget_bytes // per_row)
    if B >= 16:
        # Keep at least 2 grid steps so the "parallel" axis can shard across
        # v7x's 2 TensorCores (irrelevant on v5e/v6e with 1 TC).
        bb = min(bb, max(8, _round_down_multiple(B // 2, 8)))
    bb = min(bb, B)
    if bb >= 8:
        bb = _round_down_multiple(bb, 8)
    # NOTE: if even bb == 1 exceeds the budget (N >~ 1.5M f32 per sample), an
    # N-tiled two-pass kernel (accumulate sum / sumsq across N-tiles, then a
    # second normalize pass) would be needed; MUNIT feature maps do not hit it.
    return max(1, int(bb))


def layer_norm_forward(x, gamma, beta, *, eps=1e-5, vmem_budget_bytes=24 << 20):
    """x: (B, C, *spatial).  gamma/beta: (C,).  Returns array shaped/dtyped like x."""
    orig_shape = x.shape
    orig_dtype = x.dtype
    B, C = x.shape[0], x.shape[1]
    N = 1
    for d in x.shape[1:]:
        N *= d

    # Sublane/lane-dense per-sample view: (B, N//128, 128) when possible,
    # otherwise fall back to a single lane-major row per sample.
    if N % 128 == 0:
        R, L = N // 128, 128
    else:
        R, L = 1, N
    x3d = x.reshape(B, R, L)   # dtype preserved: no extra HBM copy / cast op

    # Expand per-channel affine params to the flattened feature width and pack
    # them into a single (2, R, L) f32 operand (one small DMA).
    rep = N // C
    gb = jnp.stack(
        [jnp.repeat(gamma.astype(jnp.float32), rep),
         jnp.repeat(beta.astype(jnp.float32), rep)],
        axis=0,
    ).reshape(2, R, L)

    itemsize = jnp.dtype(orig_dtype).itemsize
    bb = _choose_block_rows(B, N, itemsize, vmem_budget_bytes)
    grid = (pl.cdiv(B, bb),)

    # Scoped VMEM: x in/out double-buffered + gb double-buffered + headroom.
    needed = 4 * bb * N * itemsize + 2 * gb.size * 4
    vmem_limit = int(min(60 << 20, max(32 << 20, needed + (4 << 20))))

    kernel = functools.partial(_layernorm_kernel, eps=float(eps), n_feat=N)

    flops = 7 * B * N                         # sub, sq, 2 sums, mul, mul, add
    bytes_accessed = 2 * B * N * itemsize + gb.size * 4

    out3d = pl.pallas_call(
        kernel,
        out_shape=jax.ShapeDtypeStruct((B, R, L), orig_dtype),
        grid=grid,
        in_specs=[
            pl.BlockSpec((bb, R, L), lambda i: (i, 0, 0)),
            pl.BlockSpec((2, R, L), lambda i: (0, 0, 0)),
        ],
        out_specs=pl.BlockSpec((bb, R, L), lambda i: (i, 0, 0)),
        compiler_params=pltpu.CompilerParams(
            dimension_semantics=("parallel",),
            vmem_limit_bytes=vmem_limit,
        ),
        cost_estimate=pl.CostEstimate(
            flops=flops, transcendentals=B, bytes_accessed=bytes_accessed),
    )(x3d, gb)

    return out3d.reshape(orig_shape)


def layer_norm_reference(x, gamma, beta, eps):
    """Pure-JAX reference matching the PyTorch module (unbiased std)."""
    B = x.shape[0]
    xf = x.reshape(B, -1).astype(jnp.float32)
    bshape = (B,) + (1,) * (x.ndim - 1)
    mean = xf.mean(axis=1).reshape(bshape)
    std = jnp.sqrt(xf.var(axis=1, ddof=1)).reshape(bshape)
    y = (x.astype(jnp.float32) - mean) / (std + eps)
    ashape = (1, -1) + (1,) * (x.ndim - 2)
    out = y * gamma.reshape(ashape) + beta.reshape(ashape)
    return out.astype(x.dtype)


if __name__ == "__main__":
    key = jax.random.PRNGKey(0)
    kx, kg = jax.random.split(key)

    # Small shapes consistent with LayerNorm's NCHW usage in MUNIT.
    B, C, H, W = 2, 4, 16, 16     # N = C*H*W = 1024 (lane-dense, multiple of 128)
    eps = 1e-5

    x = jax.random.normal(kx, (B, C, H, W), jnp.float32)
    gamma = jax.random.uniform(kg, (C,), jnp.float32)   # torch .uniform_() -> U[0,1)
    beta = jnp.zeros((C,), jnp.float32)                 # torch.zeros(num_features)

    out = layer_norm_forward(x, gamma, beta, eps=eps)
    out = jax.block_until_ready(out)

    ref = layer_norm_reference(x, gamma, beta, eps)
    assert out.shape == x.shape
    assert out.dtype == x.dtype
    assert jnp.allclose(out, ref, atol=1e-5, rtol=1e-5)

    print("KERNEL_OK")
</pallas_src>

<mosaic_0001>
module attributes {stable_mosaic.version = 11 : i64} {
  func.func @_layernorm_kernel(%arg0: i32, %arg1: memref<2x8x128xf32, #tpu.memory_space<vmem>>, %arg2: memref<2x8x128xf32, #tpu.memory_space<vmem>>, %arg3: memref<2x8x128xf32, #tpu.memory_space<vmem>>) attributes {dimension_semantics = [#tpu.dimension_semantics<parallel>], iteration_bounds = array<i64: 1>, scalar_prefetch = 0 : i64, scratch_operands = 0 : i64, tpu.core_type = #tpu.core_type<tc>, window_params = [{transform_indices = @transform_0, window_bounds = array<i64: 2, 8, 128>}, {pipeline_mode = #tpu.pipeline_mode<synchronous>, transform_indices = @transform_1, window_bounds = array<i64: 2, 8, 128>}, {transform_indices = @transform_2, window_bounds = array<i64: 2, 8, 128>}]} {
    %c0 = arith.constant 0 : index
    %c0_0 = arith.constant 0 : index
    %c0_1 = arith.constant 0 : index
    %0 = vector.load %arg1[%c0, %c0_0, %c0_1] : memref<2x8x128xf32, #tpu.memory_space<vmem>>, vector<2x8x128xf32>
    %cst = arith.constant dense<0.000000e+00> : vector<2x8xf32>
    %1 = vector.multi_reduction <add>, %0, %cst [2] : vector<2x8x128xf32> to vector<2x8xf32>
    %2 = vector.shape_cast %1 : vector<2x8xf32> to vector<2x8x1xf32>
    %cst_2 = arith.constant dense<0.000000e+00> : vector<2x1xf32>
    %3 = vector.multi_reduction <add>, %2, %cst_2 [1] : vector<2x8x1xf32> to vector<2x1xf32>
    %4 = vector.shape_cast %3 : vector<2x1xf32> to vector<2x1x1xf32>
    %cst_3 = arith.constant 9.765625E-4 : f32
    %5 = vector.broadcast %cst_3 : f32 to vector<2x1x1xf32>
    %6 = arith.mulf %4, %5 : vector<2x1x1xf32>
    %7 = vector.broadcast %6 : vector<2x1x1xf32> to vector<2x8x128xf32>
    %8 = arith.subf %0, %7 : vector<2x8x128xf32>
    %9 = arith.mulf %8, %8 : vector<2x8x128xf32>
    %cst_4 = arith.constant dense<0.000000e+00> : vector<2x8xf32>
    %10 = vector.multi_reduction <add>, %9, %cst_4 [2] : vector<2x8x128xf32> to vector<2x8xf32>
    %11 = vector.shape_cast %10 : vector<2x8xf32> to vector<2x8x1xf32>
    %cst_5 = arith.constant dense<0.000000e+00> : vector<2x1xf32>
    %12 = vector.multi_reduction <add>, %11, %cst_5 [1] : vector<2x8x1xf32> to vector<2x1xf32>
    %13 = vector.shape_cast %12 : vector<2x1xf32> to vector<2x1x1xf32>
    %cst_6 = arith.constant 9.77517105E-4 : f32
    %14 = vector.broadcast %cst_6 : f32 to vector<2x1x1xf32>
    %15 = arith.mulf %13, %14 : vector<2x1x1xf32>
    %16 = math.sqrt %15 : vector<2x1x1xf32>
    %cst_7 = arith.constant 9.99999974E-6 : f32
    %17 = vector.broadcast %cst_7 : f32 to vector<2x1x1xf32>
    %18 = arith.addf %16, %17 : vector<2x1x1xf32>
    %19 = tpu.reciprocal %18 : vector<2x1x1xf32> -> vector<2x1x1xf32>
    %20 = vector.broadcast %19 : vector<2x1x1xf32> to vector<2x8x128xf32>
    %21 = arith.mulf %8, %20 : vector<2x8x128xf32>
    %c0_8 = arith.constant 0 : index
    %c0_9 = arith.constant 0 : index
    %c0_10 = arith.constant 0 : index
    %22 = vector.load %arg2[%c0_8, %c0_9, %c0_10] : memref<2x8x128xf32, #tpu.memory_space<vmem>>, vector<2x8x128xf32>
    %23 = vector.extract_strided_slice %22 {offsets = [0, 0, 0], sizes = [1, 8, 128], strides = [1, 1, 1]} : vector<2x8x128xf32> to vector<1x8x128xf32>
    %24 = vector.shape_cast %23 : vector<1x8x128xf32> to vector<8x128xf32>
    %25 = vector.extract_strided_slice %22 {offsets = [1, 0, 0], sizes = [1, 8, 128], strides = [1, 1, 1]} : vector<2x8x128xf32> to vector<1x8x128xf32>
    %26 = vector.shape_cast %25 : vector<1x8x128xf32> to vector<8x128xf32>
    %27 = vector.shape_cast %24 : vector<8x128xf32> to vector<1x8x128xf32>
    %28 = vector.broadcast %27 : vector<1x8x128xf32> to vector<2x8x128xf32>
    %29 = arith.mulf %21, %28 : vector<2x8x128xf32>
    %30 = vector.shape_cast %26 : vector<8x128xf32> to vector<1x8x128xf32>
    %31 = vector.broadcast %30 : vector<1x8x128xf32> to vector<2x8x128xf32>
    %32 = arith.addf %29, %31 : vector<2x8x128xf32>
    %c0_11 = arith.constant 0 : index
    %c0_12 = arith.constant 0 : index
    %c0_13 = arith.constant 0 : index
    %33 = vector.load %arg3[%c0_11, %c0_12, %c0_13] : memref<2x8x128xf32, #tpu.memory_space<vmem>>, vector<2x8x128xf32>
    tpu.vector_store %arg3[%c0_11, %c0_12, %c0_13], %32 {strides = array<i32>} : memref<2x8x128xf32, #tpu.memory_space<vmem>>, vector<2x8x128xf32>,
    return
  }
  func.func @transform_0(%arg0: i32) -> (i32, i32, i32) {
    %c0_i32 = arith.constant 0 : i32
    %c0_i32_0 = arith.constant 0 : i32
    %c0_i32_1 = arith.constant 0 : i32
    return %arg0, %c0_i32, %c0_i32_0 : i32, i32, i32
  }
  func.func @transform_1(%arg0: i32) -> (i32, i32, i32) {
    %c0_i32 = arith.constant 0 : i32
    %c0_i32_0 = arith.constant 0 : i32
    %c0_i32_1 = arith.constant 0 : i32
    %c0_i32_2 = arith.constant 0 : i32
    return %c0_i32, %c0_i32_0, %c0_i32_1 : i32, i32, i32
  }
  func.func @transform_2(%arg0: i32) -> (i32, i32, i32) {
    %c0_i32 = arith.constant 0 : i32
    %c0_i32_0 = arith.constant 0 : i32
    %c0_i32_1 = arith.constant 0 : i32
    return %arg0, %c0_i32, %c0_i32_0 : i32, i32, i32
  }
}

</mosaic_0001>

<bundles_post_ra>
// kernel: tpu_custom_call.1
= control target key start
LH: loop header
LB: loop body
LE: loop exit
PB: predicated region body
PF: predicated region fallthrough
CT: control target
= control target key end

     0   :  { %7 = vsyncpa [#allocation3], 0  ;;  %s278_s0 = inlined_call_operand.hbm [shape: f32[2,8,128], index: 0, kind: input, shape index: {}]   ;;  %s279_s1 = inlined_call_operand.hbm [shape: f32[2,8,128], index: 1, kind: input, shape index: {}]   ;;  %s280_s2 = inlined_call_operand.hbm [shape: f32[2,8,128], index: 2, kind: output, shape index: {}]  }
   0x1   :  { %8 = vsyncpa [#allocation6], 0 }
   0x2   :  { %9 = vsyncpa [#allocation4], 0  ;;  %s213_s9 = smov [#allocation2]   ;;  %s141_s13 = scalar_lea.hbm %s278_s0, 256 }
   0x3   :  { %s15_s10 = sshll.u32 %s213_s9, 4  ;;  %p142_p0 = scmp.ne.s32.totalorder %s278_s0, %s141_s13  ;;  %s16_s10 = int_to_ptr.vmem [resolvable:$true] %s15_s10 }
   0x4   :  { %p145_p1 = scmp.lt.u32.totalorder %s141_s13, %s278_s0 }
   0x6   :  { %p147_p2 = pnand %p145_p1, %p142_p0 }
   0x8   :  { %150 = shalt.err (!%p147_p2)
}
   0x9   :  { %s151_s18 = scalar_lea.vmem %s16_s10, 256  ;;  %p156_p4 = scmp.lt.s32.totalorder %s16_s10, %s16_s10 }
   0xa   :  { %p152_p3 = scmp.ne.s32.totalorder %s16_s10, %s151_s18  ;;  %p157_p5 = scmp.lt.s32.totalorder %s151_s18, %s151_s18 }
   0xc   :  { %p158_p6 = por %p157_p5, %p156_p4 }
   0xe   :  { %p159_p7 = pnand %p158_p6, %p152_p3 }
  0x10   :  { %162 = shalt.err (!%p159_p7)
}
  0x11   :  { %s214_s19 = smov 128   ;;  %s215_s20 = smov 8  }
  0x12   :  { %21 = dma.hbm_to_vmem [thread:$0]  %s278_s0, 256, %s16_s10, [#allocation3], %s214_s19, %s214_s19, %s215_s20  }
  0x13   :  { %s216_s23 = smov [#allocation5]   ;;  %s163_s27 = scalar_lea.hbm %s279_s1, 256 }
  0x14   :  { %s27_s24 = sshll.u32 %s216_s23, 4  ;;  %p164_p8 = scmp.ne.s32.totalorder %s279_s1, %s163_s27  ;;  %s28_s24 = int_to_ptr.vmem [resolvable:$true] %s27_s24 }
  0x15   :  { %p167_p9 = scmp.lt.u32.totalorder %s163_s27, %s279_s1 }
  0x17   :  { %p169_p10 = pnand %p167_p9, %p164_p8 }
  0x19   :  { %172 = shalt.err (!%p169_p10)
}
  0x1a   :  { %s173_s4 = scalar_lea.vmem %s28_s24, 256  ;;  %p178_p12 = scmp.lt.s32.totalorder %s28_s24, %s28_s24 }
  0x1b   :  { %p174_p11 = scmp.ne.s32.totalorder %s28_s24, %s173_s4  ;;  %p179_p13 = scmp.lt.s32.totalorder %s173_s4, %s173_s4 }
  0x1d   :  { %p180_p0 = por %p179_p13, %p178_p12 }
  0x1f   :  { %p181_p1 = pnand %p180_p0, %p174_p11 }
  0x21   :  { %184 = shalt.err (!%p181_p1)
}
  0x22   :  { %33 = dma.hbm_to_vmem [thread:$0]  %s279_s1, 256, %s28_s24, [#allocation6], %s214_s19, %s214_s19, %s215_s20  }
  0x23   :  { %207 = dma.done.wait [#allocation3], 256  }
  0x24   :  { %208 = vsyncadd [#allocation3], 4294967040 }
  0x25   :  { %209 = dma.done.wait [#allocation6], 256  }
  0x26   :  { %210 = vsyncadd [#allocation6], 4294967040  ;;  %v40_v0 = vld [vmem:[#allocation2] sm:$0xff]  ;;  %v41_v1 = vld [vmem:[#allocation2 + $0x8] sm:$0xff]  ;;  %s217_s1 = smov [#allocation7]  }
  0x27   :  { %42 = vadd.xlane.f32.xlu0 %v40_v0  ;;  %v102_v51 = vld [vmem:[#allocation5] sm:$0xff]  ;;  %v103_v53 = vld [vmem:[#allocation5 + $0x8] sm:$0xff]  ;;  %s115_s6 = sshll.u32 %s217_s1, 4  ;;  %s116_s6 = int_to_ptr.vmem [resolvable:$true] %s115_s6 }
  0x28   :  { %s185_s7 = scalar_lea.vmem %s116_s6, 256  ;;  %p190_p3 = scmp.lt.s32.totalorder %s116_s6, %s116_s6 }
  0x29   :  { %p186_p2 = scmp.ne.s32.totalorder %s116_s6, %s185_s7  ;;  %p191_p4 = scmp.lt.s32.totalorder %s185_s7, %s185_s7 }
  0x2b   :  { %44 = vadd.xlane.f32.xlu0 %v41_v1  ;;  %p192_p5 = por %p191_p4, %p190_p3 }
  0x2d   :  { %p193_p6 = pnand %p192_p5, %p186_p2 }
  0xb4   :  { %v43_v2 = vpop.xlane.xlu0 %42 }
  0xb5   :  { %v46_v3 = vrot.slane %v43_v2, 4 }
  0xb7   :  { %v47_v4 = vadd.f32 %v46_v3, %v43_v2 }
  0xb8   :  { %v45_v5 = vpop.xlane.xlu0 %44 }
  0xb9   :  { %v48_v6 = vrot.slane %v47_v4, 2  ;;  %v52_v7 = vrot.slane %v45_v5, 4 }
  0xbb   :  { %v49_v8 = vadd.f32 %v48_v6, %v47_v4  ;;  %v53_v9 = vadd.f32 %v52_v7, %v45_v5 }
  0xbd   :  { %v50_v10 = vrot.slane %v49_v8, 1  ;;  %v54_v11 = vrot.slane %v53_v9, 2 }
  0xbf   :  { %v55_v12 = vadd.f32 %v54_v11, %v53_v9  ;;  %v51_v13 = vadd.f32 %v50_v10, %v49_v8 }
  0xc1   :  { %v56_v14 = vrot.slane %v55_v12, 1  ;;  %v58_v15 = vmul.f32 0.0009765625, %v51_v13 }
  0xc3   :  { %v57_v16 = vadd.f32 %v56_v14, %v55_v12  ;;  %v60_v17 = vsub.f32 %v40_v0, %v58_v15 }
  0xc5   :  { %v59_v18 = vmul.f32 0.0009765625, %v57_v16  ;;  %v62_v19 = vmul.f32 %v60_v17, %v60_v17 }
  0xc7   :  { %64 = vadd.xlane.f32.xlu1 %v62_v19  ;;  %v61_v20 = vsub.f32 %v41_v1, %v59_v18 }
  0xc9   :  { %v63_v21 = vmul.f32 %v61_v20, %v61_v20 }
  0xcb   :  { %66 = vadd.xlane.f32.xlu1 %v63_v21 }
 0x154   :  { %v65_v22 = vpop.xlane.xlu1 %64 }
 0x155   :  { %v68_v23 = vrot.slane %v65_v22, 4 }
 0x157   :  { %v69_v24 = vadd.f32 %v68_v23, %v65_v22 }
 0x158   :  { %v67_v25 = vpop.xlane.xlu1 %66 }
 0x159   :  { %v70_v26 = vrot.slane %v69_v24, 2  ;;  %v74_v27 = vrot.slane %v67_v25, 4 }
 0x15b   :  { %v71_v28 = vadd.f32 %v70_v26, %v69_v24  ;;  %v75_v29 = vadd.f32 %v74_v27, %v67_v25 }
 0x15d   :  { %v72_v30 = vrot.slane %v71_v28, 1  ;;  %v76_v31 = vrot.slane %v75_v29, 2 }
 0x15f   :  { %v73_v32 = vadd.f32 %v72_v30, %v71_v28  ;;  %v77_v33 = vadd.f32 %v76_v31, %v75_v29 }
 0x161   :  { %v80_v34 = vmul.f32 0.0009775171, %v73_v32  ;;  %v78_v35 = vrot.slane %v77_v33, 1 }
 0x163   :  { %133 = vrsqrt.f32 %v80_v34  ;;  %v79_v36 = vadd.f32 %v78_v35, %v77_v33  ;;  %vm84_vm0 = vcmp.eq.f32.partialorder %v80_v34, inf  ;;  %v87_v40 = vand.u32 2147483648, %v80_v34 }
 0x164   :  { %vm86_vm1 = vcmp.eq.f32.partialorder %v80_v34, 0.0 }
 0x165   :  { %v81_v37 = vmul.f32 0.0009775171, %v79_v36 }
 0x167   :  { %135 = vrsqrt.f32 %v81_v37  ;;  %vm91_vm2 = vcmp.eq.f32.partialorder %v81_v37, inf  ;;  %v94_v46 = vand.u32 2147483648, %v81_v37  ;;  %vm93_vm3 = vcmp.eq.f32.partialorder %v81_v37, 0.0 }
 0x16d   :  { %v134_v38 = vpop.eup %133 }
 0x16e   :  { %v83_v39 = vmul.f32 %v134_v38, %v80_v34 }
 0x170   :  { %v85_v41 = vsel %vm84_vm0, %v80_v34, %v83_v39 }
 0x171   :  { %v136_v42 = vpop.eup %135  ;;  %v88_v43 = vsel %vm86_vm1, %v87_v40, %v85_v41 }
 0x172   :  { %v90_v44 = vmul.f32 %v136_v42, %v81_v37  ;;  %v96_v45 = vadd.f32 1e-05, %v88_v43 }
 0x174   :  { %v92_v47 = vsel %vm91_vm2, %v81_v37, %v90_v44  ;;  %137 = vrcp.f32 %v96_v45 }
 0x175   :  { %v95_v48 = vsel %vm93_vm3, %v94_v46, %v92_v47 }
 0x176   :  { %v97_v49 = vadd.f32 1e-05, %v95_v48 }
 0x178   :  { %139 = vrcp.f32 %v97_v49 }
 0x17e   :  { %v138_v50 = vpop.eup %137 }
 0x17f   :  { %v100_v52 = vmul.f32 %v138_v50, %v60_v17 }
 0x181   :  { %v104_v54 = vmul.f32 %v102_v51, %v100_v52 }
 0x182   :  { %v140_v55 = vpop.eup %139 }
 0x183   :  { %v101_v56 = vmul.f32 %v140_v55, %v61_v20  ;;  %v106_v57 = vadd.f32 %v104_v54, %v103_v53 }
 0x185   :  { %v105_v58 = vmul.f32 %v102_v51, %v101_v56  ;;  %108 = vst [vmem:[#allocation7] sm:$0xff] %v106_v57 }
 0x187   :  { %v107_v59 = vadd.f32 %v105_v58, %v103_v53 }
 0x189   :  { %109 = vst [vmem:[#allocation7 + $0x8] sm:$0xff] %v107_v59 }
 0x18a   :  { %196 = shalt.err (!%p193_p6)
}
 0x18b   :  { %s197_s10 = scalar_lea.hbm %s280_s2, 256 }
 0x18c   :  { %p198_p7 = scmp.ne.s32.totalorder %s280_s2, %s197_s10  ;;  %p201_p8 = scmp.lt.u32.totalorder %s197_s10, %s280_s2 }
 0x18e   :  { %p203_p9 = pnand %p201_p8, %p198_p7 }
 0x190   :  { %206 = shalt.err (!%p203_p9)
}
 0x191   :  { %121 = dma.vmem_to_hbm [thread:$0]  %s116_s6, 256, %s280_s2, [#allocation4], %s214_s19, %s214_s19, %s215_s20  }
 0x192   :  { %211 = dma.done.wait [#allocation4], 256  }
 0x193   :  { %212 = vsyncadd [#allocation4], 4294967040 }
 0x194   :  { %125 = vsyncpa [#allocation3], 1 }
 0x195   :  { %126 = vsyncpa [#allocation6], 1 }
 0x196   :  { %127 = vsyncpa [#allocation4], 1 }

</bundles_post_ra>
